<compile_context>
chip_gen: v7x
topology: tpu7x:2x2x1
jax: 0.10.0
libtpu: 0.0.40
codegen_flags: <defaults>
</compile_context>

<pallas_src>
import jax
import jax.numpy as jnp
from jax.experimental import pallas as pl
from jax.experimental.pallas import tpu as pltpu


def _round_up(x: int, m: int) -> int:
    return ((x + m - 1) // m) * m


def _vmem_tile_bytes(rows: int, cols: int, dtype) -> int:
    """Physical VMEM bytes of a [rows, cols] buffer after (sublane, 128) padding."""
    itemsize = jnp.dtype(dtype).itemsize
    sublane = 8 * max(1, 4 // itemsize)  # 8 sublanes for f32, 16 for bf16 (packed)
    return _round_up(max(rows, 1), sublane) * _round_up(max(cols, 1), 128) * itemsize


def qvalue_kernel(s_ref, a_ref, w1s_ref, w1a_ref, b1_ref, w2_ref, b2_ref,
                  w3_ref, b3_ref, o_ref):
    # Layer 1: split matmul (replaces torch.cat) + bias + ReLU; f32 accumulation.
    h1 = (jnp.dot(s_ref[...], w1s_ref[...], preferred_element_type=jnp.float32)
          + jnp.dot(a_ref[...], w1a_ref[...], preferred_element_type=jnp.float32)
          + b1_ref[...])
    h1 = jnp.maximum(h1, 0.0)
    # Layer 2: bf16 MXU matmul with f32 accumulation + bias + ReLU.
    h2 = jnp.dot(h1.astype(w2_ref.dtype), w2_ref[...],
                 preferred_element_type=jnp.float32) + b2_ref[...]
    h2 = jnp.maximum(h2, 0.0)
    # Layer 3 (out_features=1): VPU multiply + lane reduction instead of a
    # lane-sparse [TB,H2] x [H2,1] MXU matmul.
    q = jnp.sum(h2 * w3_ref[...], axis=-1, keepdims=True) + b3_ref[...]
    o_ref[...] = q.astype(o_ref.dtype)


def qvalue_net(state, action, params, *, max_tile=2048, target_grid=4):
    """state: [B, obs_dim], action: [B, act_dim] -> [B, 1] (float32)."""
    w1s, w1a, b1, w2, b2, w3_row, b3 = params
    B, obs_dim = state.shape
    act_dim = action.shape[1]
    h1d = w1s.shape[1]
    h2d = w2.shape[1]

    # Stream inputs in the weights' dtype (bf16 by default) to halve HBM traffic.
    in_dtype = w1s.dtype
    state = state.astype(in_dtype)
    action = action.astype(in_dtype)

    # Batch tile: multiple of 16 sublanes (bf16 packing), large for overhead
    # amortization, capped so the grid keeps >= target_grid steps (megacore).
    TB = max(16, min(max_tile, _round_up(pl.cdiv(B, target_grid), 16)))
    grid = (pl.cdiv(B, TB),)  # last block may be partial; OOB rows are dropped

    row = lambda i: (i, 0)      # streamed per-tile arrays
    const = lambda i: (0, 0)    # VMEM-resident weights/biases

    # Advisory cost estimate for XLA's scheduler.
    itemsize = jnp.dtype(in_dtype).itemsize
    flops = 2 * B * (obs_dim * h1d + act_dim * h1d + h1d * h2d + h2d)
    bytes_accessed = (
        itemsize * (B * (obs_dim + act_dim)
                    + obs_dim * h1d + act_dim * h1d + h1d * h2d)
        + 4 * (B + h1d + 2 * h2d + 1))
    cost = pl.CostEstimate(flops=flops, transcendentals=0,
                           bytes_accessed=bytes_accessed)

    # VMEM budget using physically padded (sublane, 128) tile sizes.
    streamed = 2 * (_vmem_tile_bytes(TB, obs_dim, in_dtype)      # double-buffered
                    + _vmem_tile_bytes(TB, act_dim, in_dtype)
                    + _vmem_tile_bytes(TB, 1, jnp.float32))
    resident = 2 * (_vmem_tile_bytes(obs_dim, h1d, w1s.dtype)
                    + _vmem_tile_bytes(act_dim, h1d, w1a.dtype)
                    + _vmem_tile_bytes(1, h1d, jnp.float32)
                    + _vmem_tile_bytes(h1d, h2d, w2.dtype)
                    + 2 * _vmem_tile_bytes(1, h2d, jnp.float32)
                    + _vmem_tile_bytes(1, 1, jnp.float32))
    scratch = (_vmem_tile_bytes(TB, h1d, jnp.float32)            # h1 (f32)
               + _vmem_tile_bytes(TB, h1d, in_dtype)             # h1 (bf16 cast)
               + 2 * _vmem_tile_bytes(TB, h2d, jnp.float32)      # h2, h2*w3
               + _vmem_tile_bytes(TB, 1, jnp.float32))           # q column
    need = streamed + resident + scratch
    # ~9 MB at TB=2048; 2x headroom, capped at 30 MiB (fits v7x 64 MiB physical).
    vmem_bytes = int(max(4 << 20, min(30 << 20, 2 * need)))

    out = pl.pallas_call(
        qvalue_kernel,
        out_shape=jax.ShapeDtypeStruct((B, 1), jnp.float32),
        grid=grid,
        in_specs=[
            pl.BlockSpec((TB, obs_dim), row),
            pl.BlockSpec((TB, act_dim), row),
            pl.BlockSpec((obs_dim, h1d), const),
            pl.BlockSpec((act_dim, h1d), const),
            pl.BlockSpec((1, h1d), const),
            pl.BlockSpec((h1d, h2d), const),
            pl.BlockSpec((1, h2d), const),
            pl.BlockSpec((1, h2d), const),   # w3 stored as lane-dense row [1, h2d]
            pl.BlockSpec((1, 1), const),
        ],
        out_specs=pl.BlockSpec((TB, 1), row),
        compiler_params=pltpu.CompilerParams(
            dimension_semantics=("parallel",),
            vmem_limit_bytes=vmem_bytes),
        cost_estimate=cost,
    )(state, action, w1s, w1a, b1, w2, b2, w3_row, b3)

    return out


def init_params(key, obs_dim, act_dim, hidden_dims, *, weight_dtype=jnp.bfloat16):
    """PyTorch-nn.Linear-style init (U[-1/sqrt(fan_in), 1/sqrt(fan_in)]).

    Matmul weights are stored pre-transposed [in, out] in bf16 (streamed /
    MXU dtype); the first layer's weight is pre-split into state/action halves;
    w3 is stored as a lane-dense f32 row [1, H2]; biases are f32 [1, out].
    """
    h1d, h2d = hidden_dims[0], hidden_dims[1]
    keys = jax.random.split(key, 7)

    def u(k, shape, fan_in, dtype):
        bound = 1.0 / (fan_in ** 0.5)
        return jax.random.uniform(k, shape, minval=-bound, maxval=bound,
                                  dtype=jnp.float32).astype(dtype)

    fan1 = obs_dim + act_dim
    w1s = u(keys[0], (obs_dim, h1d), fan1, weight_dtype)
    w1a = u(keys[1], (act_dim, h1d), fan1, weight_dtype)
    b1 = u(keys[2], (1, h1d), fan1, jnp.float32)
    w2 = u(keys[3], (h1d, h2d), h1d, weight_dtype)
    b2 = u(keys[4], (1, h2d), h1d, jnp.float32)
    w3_row = u(keys[5], (1, h2d), h2d, jnp.float32)  # logical weight is w3_row.T
    b3 = u(keys[6], (1, 1), h2d, jnp.float32)
    return (w1s, w1a, b1, w2, b2, w3_row, b3)


def qvalue_net_ref(state, action, params, *, match_kernel_quantization=True):
    """Pure-JAX reference following the original torch module (with concat).

    With match_kernel_quantization=True it applies the same bf16 quantization
    points as the kernel (inputs and the h1 activation), so the comparison can
    be tight; with False it is the plain f32 forward (loose tolerance).
    """
    w1s, w1a, b1, w2, b2, w3_row, b3 = params
    f32 = jnp.float32
    hp = jax.lax.Precision.HIGHEST
    if match_kernel_quantization:
        state = state.astype(jnp.bfloat16)
        action = action.astype(jnp.bfloat16)
    x = jnp.concatenate([state.astype(f32), action.astype(f32)], axis=-1)
    w1 = jnp.concatenate([w1s, w1a], axis=0).astype(f32)
    h1 = jnp.maximum(jnp.dot(x, w1, precision=hp) + b1, 0.0)
    if match_kernel_quantization:
        h1 = h1.astype(jnp.bfloat16).astype(f32)
    h2 = jnp.maximum(jnp.dot(h1, w2.astype(f32), precision=hp) + b2, 0.0)
    return jnp.dot(h2, w3_row.astype(f32).T, precision=hp) + b3


if __name__ == "__main__":
    key = jax.random.PRNGKey(0)
    k_params, k_state, k_action, k_state2, k_action2 = jax.random.split(key, 5)

    obs_dim = 16
    act_dim = 8
    hidden_dims = [32, 32]
    params = init_params(k_params, obs_dim, act_dim, hidden_dims)

    # Small-shape check (2 full tiles, grid > 1).
    batch = 32
    state = jax.random.normal(k_state, (batch, obs_dim), dtype=jnp.float32)
    action = jax.random.normal(k_action, (batch, act_dim), dtype=jnp.float32)
    q = qvalue_net(state, action, params)
    jax.block_until_ready(q)
    assert q.shape == (batch, 1)
    q_ref_tight = qvalue_net_ref(state, action, params, match_kernel_quantization=True)
    q_ref_f32 = qvalue_net_ref(state, action, params, match_kernel_quantization=False)
    assert jnp.allclose(q, q_ref_tight, atol=1e-4, rtol=1e-4), "mismatch (small, tight)"
    assert jnp.allclose(q, q_ref_f32, atol=5e-2, rtol=5e-2), "mismatch (small, f32)"

    # Ragged-batch check: grid of 4 with a partial last block (no jnp.pad copy).
    batch2 = 1000
    state2 = jax.random.normal(k_state2, (batch2, obs_dim), dtype=jnp.float32)
    action2 = jax.random.normal(k_action2, (batch2, act_dim), dtype=jnp.float32)
    q2 = qvalue_net(state2, action2, params)
    jax.block_until_ready(q2)
    assert q2.shape == (batch2, 1)
    q2_ref_tight = qvalue_net_ref(state2, action2, params, match_kernel_quantization=True)
    q2_ref_f32 = qvalue_net_ref(state2, action2, params, match_kernel_quantization=False)
    assert jnp.allclose(q2, q2_ref_tight, atol=1e-4, rtol=1e-4), "mismatch (tiled, tight)"
    assert jnp.allclose(q2, q2_ref_f32, atol=5e-2, rtol=5e-2), "mismatch (tiled, f32)"

    print("KERNEL_OK")
</pallas_src>

<mosaic_0001>
module attributes {stable_mosaic.version = 11 : i64} {
  func.func @qvalue_kernel(%arg0: i32, %arg1: memref<16x16xbf16, #tpu.memory_space<vmem>>, %arg2: memref<16x8xbf16, #tpu.memory_space<vmem>>, %arg3: memref<16x32xbf16, #tpu.memory_space<vmem>>, %arg4: memref<8x32xbf16, #tpu.memory_space<vmem>>, %arg5: memref<1x32xf32, #tpu.memory_space<vmem>>, %arg6: memref<32x32xbf16, #tpu.memory_space<vmem>>, %arg7: memref<1x32xf32, #tpu.memory_space<vmem>>, %arg8: memref<1x32xf32, #tpu.memory_space<vmem>>, %arg9: memref<1x1xf32, #tpu.memory_space<vmem>>, %arg10: memref<16x1xf32, #tpu.memory_space<vmem>>) attributes {dimension_semantics = [#tpu.dimension_semantics<parallel>], iteration_bounds = array<i64: 2>, scalar_prefetch = 0 : i64, scratch_operands = 0 : i64, tpu.core_type = #tpu.core_type<tc>, window_params = [{transform_indices = @transform_0, window_bounds = array<i64: 16, 16>}, {transform_indices = @transform_1, window_bounds = array<i64: 16, 8>}, {pipeline_mode = #tpu.pipeline_mode<synchronous>, transform_indices = @transform_2, window_bounds = array<i64: 16, 32>}, {pipeline_mode = #tpu.pipeline_mode<synchronous>, transform_indices = @transform_3, window_bounds = array<i64: 8, 32>}, {pipeline_mode = #tpu.pipeline_mode<synchronous>, transform_indices = @transform_4, window_bounds = array<i64: 1, 32>}, {pipeline_mode = #tpu.pipeline_mode<synchronous>, transform_indices = @transform_5, window_bounds = array<i64: 32, 32>}, {pipeline_mode = #tpu.pipeline_mode<synchronous>, transform_indices = @transform_6, window_bounds = array<i64: 1, 32>}, {pipeline_mode = #tpu.pipeline_mode<synchronous>, transform_indices = @transform_7, window_bounds = array<i64: 1, 32>}, {pipeline_mode = #tpu.pipeline_mode<synchronous>, transform_indices = @transform_8, window_bounds = array<i64: 1, 1>}, {transform_indices = @transform_9, window_bounds = array<i64: 16, 1>}]} {
    %c0 = arith.constant 0 : index
    %c0_0 = arith.constant 0 : index
    %0 = vector.load %arg1[%c0, %c0_0] : memref<16x16xbf16, #tpu.memory_space<vmem>>, vector<16x16xbf16>
    %c0_1 = arith.constant 0 : index
    %c0_2 = arith.constant 0 : index
    %1 = vector.load %arg3[%c0_1, %c0_2] : memref<16x32xbf16, #tpu.memory_space<vmem>>, vector<16x32xbf16>
    %cst = arith.constant dense<0.000000e+00> : vector<16x32xf32>
    %2 = tpu.matmul %0, %1, %cst {dimension_numbers = #tpu.dot_dimension_numbers<[1], [0], [0], [1], [0, 0, 1, 1], [], []>} : vector<16x16xbf16>, vector<16x32xbf16>, vector<16x32xf32> -> vector<16x32xf32>
    %c0_3 = arith.constant 0 : index
    %c0_4 = arith.constant 0 : index
    %3 = vector.load %arg2[%c0_3, %c0_4] : memref<16x8xbf16, #tpu.memory_space<vmem>>, vector<16x8xbf16>
    %c0_5 = arith.constant 0 : index
    %c0_6 = arith.constant 0 : index
    %4 = vector.load %arg4[%c0_5, %c0_6] : memref<8x32xbf16, #tpu.memory_space<vmem>>, vector<8x32xbf16>
    %cst_7 = arith.constant dense<0.000000e+00> : vector<16x32xf32>
    %5 = tpu.matmul %3, %4, %cst_7 {dimension_numbers = #tpu.dot_dimension_numbers<[1], [0], [0], [1], [0, 0, 1, 1], [], []>} : vector<16x8xbf16>, vector<8x32xbf16>, vector<16x32xf32> -> vector<16x32xf32>
    %6 = arith.addf %2, %5 : vector<16x32xf32>
    %c0_8 = arith.constant 0 : index
    %c0_9 = arith.constant 0 : index
    %7 = vector.load %arg5[%c0_8, %c0_9] : memref<1x32xf32, #tpu.memory_space<vmem>>, vector<1x32xf32>
    %8 = vector.broadcast %7 : vector<1x32xf32> to vector<16x32xf32>
    %9 = arith.addf %6, %8 : vector<16x32xf32>
    %cst_10 = arith.constant 0.000000e+00 : f32
    %10 = vector.broadcast %cst_10 : f32 to vector<16x32xf32>
    %11 = arith.maximumf %9, %10 : vector<16x32xf32>
    %12 = arith.truncf %11 : vector<16x32xf32> to vector<16x32xbf16>
    %c0_11 = arith.constant 0 : index
    %c0_12 = arith.constant 0 : index
    %13 = vector.load %arg6[%c0_11, %c0_12] : memref<32x32xbf16, #tpu.memory_space<vmem>>, vector<32x32xbf16>
    %cst_13 = arith.constant dense<0.000000e+00> : vector<16x32xf32>
    %14 = tpu.matmul %12, %13, %cst_13 {dimension_numbers = #tpu.dot_dimension_numbers<[1], [0], [0], [1], [0, 0, 1, 1], [], []>} : vector<16x32xbf16>, vector<32x32xbf16>, vector<16x32xf32> -> vector<16x32xf32>
    %c0_14 = arith.constant 0 : index
    %c0_15 = arith.constant 0 : index
    %15 = vector.load %arg7[%c0_14, %c0_15] : memref<1x32xf32, #tpu.memory_space<vmem>>, vector<1x32xf32>
    %16 = vector.broadcast %15 : vector<1x32xf32> to vector<16x32xf32>
    %17 = arith.addf %14, %16 : vector<16x32xf32>
    %cst_16 = arith.constant 0.000000e+00 : f32
    %18 = vector.broadcast %cst_16 : f32 to vector<16x32xf32>
    %19 = arith.maximumf %17, %18 : vector<16x32xf32>
    %c0_17 = arith.constant 0 : index
    %c0_18 = arith.constant 0 : index
    %20 = vector.load %arg8[%c0_17, %c0_18] : memref<1x32xf32, #tpu.memory_space<vmem>>, vector<1x32xf32>
    %21 = vector.broadcast %20 : vector<1x32xf32> to vector<16x32xf32>
    %22 = arith.mulf %19, %21 : vector<16x32xf32>
    %cst_19 = arith.constant dense<0.000000e+00> : vector<16xf32>
    %23 = vector.multi_reduction <add>, %22, %cst_19 [1] : vector<16x32xf32> to vector<16xf32>
    %24 = vector.shape_cast %23 : vector<16xf32> to vector<16x1xf32>
    %c0_20 = arith.constant 0 : index
    %c0_21 = arith.constant 0 : index
    %25 = vector.load %arg9[%c0_20, %c0_21] : memref<1x1xf32, #tpu.memory_space<vmem>>, vector<1x1xf32>
    %26 = vector.broadcast %25 : vector<1x1xf32> to vector<16x1xf32>
    %27 = arith.addf %24, %26 : vector<16x1xf32>
    %c0_22 = arith.constant 0 : index
    %c0_23 = arith.constant 0 : index
    %28 = vector.load %arg10[%c0_22, %c0_23] : memref<16x1xf32, #tpu.memory_space<vmem>>, vector<16x1xf32>
    tpu.vector_store %arg10[%c0_22, %c0_23], %27 {strides = array<i32>} : memref<16x1xf32, #tpu.memory_space<vmem>>, vector<16x1xf32>,
    return
  }
  func.func @transform_0(%arg0: i32) -> (i32, i32) {
    %c0_i32 = arith.constant 0 : i32
    %c0_i32_0 = arith.constant 0 : i32
    return %arg0, %c0_i32 : i32, i32
  }
  func.func @transform_1(%arg0: i32) -> (i32, i32) {
    %c0_i32 = arith.constant 0 : i32
    %c0_i32_0 = arith.constant 0 : i32
    return %arg0, %c0_i32 : i32, i32
  }
  func.func @transform_2(%arg0: i32) -> (i32, i32) {
    %c0_i32 = arith.constant 0 : i32
    %c0_i32_0 = arith.constant 0 : i32
    %c0_i32_1 = arith.constant 0 : i32
    return %c0_i32, %c0_i32_0 : i32, i32
  }
  func.func @transform_3(%arg0: i32) -> (i32, i32) {
    %c0_i32 = arith.constant 0 : i32
    %c0_i32_0 = arith.constant 0 : i32
    %c0_i32_1 = arith.constant 0 : i32
    return %c0_i32, %c0_i32_0 : i32, i32
  }
  func.func @transform_4(%arg0: i32) -> (i32, i32) {
    %c0_i32 = arith.constant 0 : i32
    %c0_i32_0 = arith.constant 0 : i32
    %c0_i32_1 = arith.constant 0 : i32
    return %c0_i32, %c0_i32_0 : i32, i32
  }
  func.func @transform_5(%arg0: i32) -> (i32, i32) {
    %c0_i32 = arith.constant 0 : i32
    %c0_i32_0 = arith.constant 0 : i32
    %c0_i32_1 = arith.constant 0 : i32
    return %c0_i32, %c0_i32_0 : i32, i32
  }
  func.func @transform_6(%arg0: i32) -> (i32, i32) {
    %c0_i32 = arith.constant 0 : i32
    %c0_i32_0 = arith.constant 0 : i32
    %c0_i32_1 = arith.constant 0 : i32
    return %c0_i32, %c0_i32_0 : i32, i32
  }
  func.func @transform_7(%arg0: i32) -> (i32, i32) {
    %c0_i32 = arith.constant 0 : i32
    %c0_i32_0 = arith.constant 0 : i32
    %c0_i32_1 = arith.constant 0 : i32
    return %c0_i32, %c0_i32_0 : i32, i32
  }
  func.func @transform_8(%arg0: i32) -> (i32, i32) {
    %c0_i32 = arith.constant 0 : i32
    %c0_i32_0 = arith.constant 0 : i32
    %c0_i32_1 = arith.constant 0 : i32
    return %c0_i32, %c0_i32_0 : i32, i32
  }
  func.func @transform_9(%arg0: i32) -> (i32, i32) {
    %c0_i32 = arith.constant 0 : i32
    %c0_i32_0 = arith.constant 0 : i32
    return %arg0, %c0_i32 : i32, i32
  }
}

</mosaic_0001>

<bundles_post_ra>
// kernel: tpu_custom_call.1
= control target key start
LH: loop header
LB: loop body
LE: loop exit
PB: predicated region body
PF: predicated region fallthrough
CT: control target
= control target key end

     0   :  { %s785_s11 = smov 0   ;;  %s836_s0 = inlined_call_operand.vmem [shape: bf16[32,16], index: 0, kind: input, shape index: {}]   ;;  %s837_s1 = inlined_call_operand.vmem [shape: bf16[32,8], index: 1, kind: input, shape index: {}]   ;;  %s838_s2 = inlined_call_operand.vmem [shape: bf16[16,32], index: 2, kind: input, shape index: {}]   ;;  %s839_s3 = inlined_call_operand.vmem [shape: bf16[8,32], index: 3, kind: input, shape index: {}]   ;;  %s840_s4 = inlined_call_operand.vmem [shape: f32[1,32], index: 4, kind: input, shape index: {}]   ;;  %s841_s5 = inlined_call_operand.vmem [shape: bf16[32,32], index: 5, kind: input, shape index: {}]   ;;  %s842_s6 = inlined_call_operand.vmem [shape: f32[1,32], index: 6, kind: input, shape index: {}]   ;;  %s843_s7 = inlined_call_operand.vmem [shape: f32[1,32], index: 7, kind: input, shape index: {}]   ;;  %s844_s8 = inlined_call_operand.<no memory space> [shape: f32[1,1], index: 8, kind: input, shape index: {}]   ;;  %s845_s9 = inlined_call_operand.vmem [shape: f32[32,1], index: 9, kind: output, shape index: {}]  }
   0x1   :  { %v14_v0 = vstv %s844_s8 }
   0x2   :  { %15 = vst [vmem:[#allocation2] sm:$0x1] %v14_v0 }
   0x3 LB: > { %s655_s12 = sadd.s32 4294967295, %s728_s11   ;;  %p659_p0 = scmp.ge.s32.totalorder %s728_s11, 1  ;;  %s728_s11 = sphi %s785_s11, %s21_s11  }
   0x4   : > { %p301_p1 = scmp.lt.s32.totalorder %s728_s11, 3 }
   0x6   : > { %p302_p2 = pnand %p659_p0, %p301_p1 }
   0x7   : > { %v367_v1 = vld [vmem:[%s839_s3] sm:$0xf] (!%p302_p2)  ;;  %vm377_vm0 = vcmask (!%p302_p2), 1043456   ;;  %v730_v2 = vmov (!%p302_p2), 0.0   ;;  %s660_s16 = sshll.u32 (!%p302_p2), %s655_s12, 1  ;;  %vm731_vm1 = vmmov (!%p302_p2), 0  }
   0x8   : > { %305 = sbr.rel (%p302_p2) target bundleno = 610 (0x262), region = 56  ;;  %687 = vmatprep.subr.bf16.mxu0 (!%p302_p2), %v730_v2  ;;  %693 = vmatprep.subr.bf16.mxu1 (!%p302_p2), %v730_v2  ;;  %v379_v3 = vsel (!%p302_p2), %vm377_vm0, %v367_v1, 0  ;;  %v717_v4 = vld [vmem:[%s838_s2] sm:$0xff] (!%p302_p2)   ;;  %p343_p3 = scmp.lt.s32.totalorder (!%p302_p2), %s660_s16, 3  ;;  %vm373_vm2 = vcmask (!%p302_p2), 64512   ;;  %vm433_vm3 = vcmask (!%p302_p2), 130048  }
   0x9   : > { %688 = vmatpush3.bf16.msra.mxu0 (!%p302_p2), %v379_v3  ;;  %689 = vmatprep.mubr.msk.bf16.mxu0 (!%p302_p2), %vm731_vm1, %v730_v2  ;;  %v720_v7 = vld [vmem:[%s841_s5] sm:$0xff] (!%p302_p2)   ;;  %v721_v8 = vld [vmem:[%s841_s5 + $0x8] sm:$0xff] (!%p302_p2)   ;;  %vm513_vm4 = vcmask (!%p302_p2), 261120   ;;  %vm584_vm5 = vcmask (!%p302_p2), 7168  }
   0xa   : > { %694 = vmatpush3.bf16.msra.mxu1 (!%p302_p2), %v717_v4  ;;  %695 = vmatprep.mubr.msk.bf16.mxu1 (!%p302_p2), %vm731_vm1, %v730_v2  ;;  %v671_v11 = vld [vmem:[%s840_s4] ss:$0 sm:$0xff] (!%p302_p2) }
   0xb   : > { %699 = vmatprep.subr.bf16.mxu0 (!%p302_p2), %v730_v2  ;;  %v672_v25 = vld [vmem:[%s842_s6] ss:$0 sm:$0xff] (!%p302_p2) }
   0xc   : > { %v676_v30 = vld [vmem:[%s843_s7] ss:$0 sm:$0xff] (!%p302_p2) }
   0xd   : > { %v677_v39 = vld [vmem:[#allocation2] ss:$0 sm:$0xff] (!%p302_p2) }
   0xf   : > { %s847_s16 = smov (!%p343_p3, %s660_s16), 3 }
  0x10   : > { %s661_s17 = sshll.u32 %s847_s16, 2  ;;  %s665_s14 = sshll.u32 %s847_s16, 3 }
  0x11   : > { %s352_s20 = scalar_lea.vmem %s837_s1, %s661_s17  ;;  %s346_s23 = scalar_lea.vmem %s836_s0, %s661_s17 }
  0x12   : > { %v718_v5 = vld [vmem:[%s352_s20] sm:$0xff]   ;;  %s358_s17 = scalar_lea.vmem %s845_s9, %s665_s14 }
  0x13   : > { %v719_v6 = vld [vmem:[%s346_s23] sm:$0xff]   ;;  %690 = vmatmul.mubr.msk.bf16.vlgmr.msra.gmra.mrb[0].mxu0 %vm373_vm2, %v718_v5 }
  0x14   : > { %696 = vmatmul.mubr.msk.bf16.vlgmr.msra.gmra.mrb[0].mxu1 %vm433_vm3, %v719_v6  ;;  %703 = vmatprep.mubr.msk.bf16.mxu0 %vm731_vm1, %v730_v2 }
  0x15   : > { %700 = vmatpush3.bf16.msra.mxu0 %v720_v7 }
  0x16   : > { %701 = vmatprep.subr.bf16.mxu0 %v730_v2 }
  0x19   : > { %702 = vmatpush3.bf16.msra.mxu0 %v721_v8 }
  0xe6   : > { %v415_v9 = vpop.f32.mrb[0].mxu0 }
  0xe7   : > { %v471_v10 = vpop.f32.mrb[0].mxu1  ;;  %v691_v12 = vpop.f32.mrb[1].mxu0 }
  0xe8   : > { %v472_v13 = vadd.f32 %v471_v10, %v415_v9  ;;  %v697_v14 = vpop.f32.mrb[1].mxu1  ;;  %v418_v15 = vpop.f32.mrb[2].mxu0 }
  0xe9   : > { %v474_v16 = vpop.f32.mrb[2].mxu1  ;;  %v692_v17 = vpop.f32.mrb[3].mxu0 }
  0xea   : > { %v485_v18 = vadd.f32 %v671_v11, %v472_v13  ;;  %v475_v19 = vadd.f32 %v474_v16, %v418_v15  ;;  %v698_v20 = vpop.f32.mrb[3].mxu1 }
  0xec   : > { %v486_v21 = vadd.f32 %v671_v11, %v475_v19  ;;  %v487_v22 = vmax.f32 %v485_v18, 0.0 }
  0xee   : > { %v488_v23 = vmax.f32 %v486_v21, 0.0 }
  0xf0   : > { %v489_v24 = vpack.c.bf16 %v488_v23, %v487_v22 }
  0xf2   : > { %704 = vmatmul.mubr.msk.bf16.vlgmr.msra.gmra.mrb[4].mxu0 %vm513_vm4, %v489_v24 }
 0x1c5   : > { %v551_v26 = vpop.f32.mrb[4].mxu0 }
 0x1c6   : > { %v552_v27 = vadd.f32 %v672_v25, %v551_v26  ;;  %v705_v28 = vpop.f32.mrb[5].mxu0 }
 0x1c7   : > { %v554_v29 = vpop.f32.mrb[6].mxu0 }
 0x1c8   : > { %v558_v31 = vmax.f32 %v552_v27, 0.0  ;;  %v555_v32 = vadd.f32 %v672_v25, %v554_v29  ;;  %v706_v33 = vpop.f32.mrb[7].mxu0 }
 0x1ca   : > { %v559_v34 = vmax.f32 %v555_v32, 0.0  ;;  %v567_v35 = vmul.f32 %v676_v30, %v558_v31 }
 0x1cc   : > { %v569_v36 = vsel %vm513_vm4, %v567_v35, 0.0  ;;  %v568_v37 = vmul.f32 %v676_v30, %v559_v34 }
 0x1cd   : > { %570 = vadd.xlane.f32.xlu0 %v569_v36 }
 0x1ce   : > { %v572_v38 = vsel %vm513_vm4, %v568_v37, 0.0 }
 0x1d1   : > { %573 = vadd.xlane.f32.xlu0 %v572_v38 }
 0x25a   : > { %v571_v40 = vpop.xlane.xlu0 %570 }
 0x25b   : > { %v582_v41 = vadd.f32 %v677_v39, %v571_v40 }
 0x25d   : > { %585 = vst.msk [vmem:[%s358_s17] sm:$0xff] %vm584_vm5, %v582_v41 }
 0x25e   : > { %v574_v42 = vpop.xlane.xlu0 %573 }
 0x25f   : > { %v583_v43 = vadd.f32 %v677_v39, %v574_v42 }
 0x261   : > { %586 = vst.msk [vmem:[%s358_s17 + $0x8] sm:$0xff] %vm584_vm5, %v583_v43 }
 0x262 PF: > { %s21_s11 = sadd.s32 1, %s728_s11  }
 0x263   : > { %p18_p4 = scmp.ge.s32.totalorder %s21_s11, 4  }
 0x265   :  { %20 = sbr.rel (!%p18_p4) target bundleno = 3 (0x3), region = 89 }

</bundles_post_ra>
